<compile_context>
chip_gen: v5e
topology: v5e:2x2
jax: 0.10.0
libtpu: 0.0.40
codegen_flags: <defaults>
</compile_context>

<pallas_src>
import jax
import jax.numpy as jnp
from jax.experimental import pallas as pl
from jax.experimental.pallas import tpu as pltpu


def _expansion_kernel(x_ref, w_ref, bias_ref, o_ref):
    # x_ref:    (C_in, TILE_S)      channel-major slab of one image's pixels
    # w_ref:    (TILE_CO, C_in)     1x1 conv weight with BN scale folded in
    # bias_ref: (TILE_CO, 1)        folded BN bias = beta - mean*gamma/sqrt(var+eps)
    # o_ref:    (TILE_CO, TILE_S)
    y = jnp.dot(w_ref[...], x_ref[...], preferred_element_type=jnp.float32)
    y = y + bias_ref[...]
    # SiLU / swish (ALIGN vision hidden_act); sigmoid lowers to the EUP slot.
    o_ref[...] = (y * jax.nn.sigmoid(y)).astype(o_ref.dtype)


def _round_up(v, m):
    return ((v + m - 1) // m) * m


def _choose_tiles(n, c_in, c_out, s, x_bpe, budget):
    """Pick (tile_co, tile_s) from the VMEM budget.

    tile_s: lane axis, multiple of 128 (lane-dense stores), as large as fits.
    tile_co: full c_out when it fits; otherwise a multiple of 256 so weight /
             output blocks stay sublane-aligned and MXU friendly.
    """
    # Largest multiple of 128 that does not exceed S (unless S < 128).
    s_cap = min(max(128, (s // 128) * 128), 8 * 1024)

    def vmem_need(tco, ts):
        return (2 * c_in * ts * x_bpe        # x stream (double-buffered)
                + 2 * tco * ts * x_bpe       # out stream (double-buffered)
                + 2 * tco * c_in * x_bpe     # weight (2 bufs even w/ const idx)
                + 2 * tco * 4                # bias (f32)
                + 2 * tco * ts * 4)          # f32 matmul result + epilogue temp

    def max_ts(tco):
        ts = s_cap
        while ts > 128 and vmem_need(tco, ts) > budget:
            ts -= 128
        return ts

    tile_co = c_out
    tile_s = max_ts(tile_co)

    # Large expansion layers (C_out up to ~3840 in ALIGN/EfficientNet-B7):
    # tile C_out rather than strangling tile_s.
    if tile_s < 512 and c_out > 256:
        for cand in (1024, 512, 256):
            ts = max_ts(cand)
            if ts >= min(512, s_cap):
                tile_co, tile_s = cand, ts
                break

    # v7x has 2 TensorCores per chip: make sure there are >= 2 grid steps.
    n_steps = n * pl.cdiv(c_out, tile_co) * pl.cdiv(s, tile_s)
    if n_steps < 2 and s >= 256:
        tile_s = _round_up(_round_up(s, 128) // 2, 128)

    return tile_co, tile_s


def align_vision_expansion_layer(x_nchw, conv_w, bn_gamma, bn_beta,
                                 bn_mean, bn_var, eps=1e-3, stream_dtype=None):
    """Fused 1x1 conv (no bias) + inference BatchNorm + SiLU.

    x_nchw:  (N, C_in, H, W)
    conv_w:  (C_out, C_in) or the PyTorch (C_out, C_in, 1, 1) layout.
    stream_dtype: dtype used to stream activations/weights through the MXU
        (defaults to x dtype; pass jnp.bfloat16 to halve HBM traffic).
    """
    n, c_in, h, w = x_nchw.shape
    if conv_w.ndim == 4:                      # accept PyTorch conv weight layout
        conv_w = conv_w[:, :, 0, 0]
    c_out = conv_w.shape[0]
    s = h * w
    if stream_dtype is None:
        stream_dtype = x_nchw.dtype

    # Channel-major view: NCHW -> (N, C_in, S). Pure reshape, no data movement.
    x = x_nchw.reshape(n, c_in, s).astype(stream_dtype)

    # Fold BN scale into the conv weight; keep only the f32 bias for the kernel.
    scale = bn_gamma.astype(jnp.float32) / jnp.sqrt(
        bn_var.astype(jnp.float32) + eps)
    w_scaled = (conv_w.astype(jnp.float32) * scale[:, None]).astype(stream_dtype)
    bias = (bn_beta.astype(jnp.float32)
            - bn_mean.astype(jnp.float32) * scale).reshape(c_out, 1)

    # Per-generation scoped VMEM cap: leave headroom on v7x (64 MiB physical);
    # v5e/v6e have 128 MiB so a larger scoped limit is safe.
    try:
        vmem_cap = int(pltpu.get_tpu_info().vmem_capacity_bytes)
    except Exception:
        vmem_cap = 64 << 20                   # conservative (v7x) assumption
    scoped_limit = (38 << 20) if vmem_cap <= (64 << 20) else (64 << 20)
    budget = int(0.6 * scoped_limit)          # streamed buffers + f32 temps

    x_bpe = jnp.dtype(stream_dtype).itemsize
    tile_co, tile_s = _choose_tiles(n, c_in, c_out, s, x_bpe, budget)

    grid = (n, pl.cdiv(c_out, tile_co), pl.cdiv(s, tile_s))

    cost = pl.CostEstimate(
        flops=2 * n * s * c_in * c_out + 4 * n * s * c_out,
        transcendentals=n * s * c_out,
        bytes_accessed=(n * c_in * s + n * c_out * s) * x_bpe
                       + c_out * c_in * x_bpe + c_out * 4,
    )

    out = pl.pallas_call(
        _expansion_kernel,
        out_shape=jax.ShapeDtypeStruct((n, c_out, s), stream_dtype),
        grid_spec=pltpu.PrefetchScalarGridSpec(
            num_scalar_prefetch=0,
            grid=grid,
            in_specs=[
                # batch dim squeezed; kernel sees (C_in, TILE_S)
                pl.BlockSpec((None, c_in, tile_s),
                             lambda b, co, si: (b, 0, si)),
                # grid-invariant along b/si; re-fetched only when co changes
                pl.BlockSpec((tile_co, c_in), lambda b, co, si: (co, 0)),
                pl.BlockSpec((tile_co, 1), lambda b, co, si: (co, 0)),
            ],
            out_specs=pl.BlockSpec((None, tile_co, tile_s),
                                   lambda b, co, si: (b, co, si)),
        ),
        compiler_params=pltpu.CompilerParams(
            dimension_semantics=("parallel", "parallel", "parallel"),
            vmem_limit_bytes=scoped_limit,
        ),
        cost_estimate=cost,
    )(x, w_scaled, bias)

    return out.reshape(n, c_out, h, w)        # already NCHW — free reshape


def _reference(x_nchw, conv_w, bn_gamma, bn_beta, bn_mean, bn_var, eps=1e-3):
    # plain-JAX reference: 1x1 conv (no bias) + inference BN + SiLU, all f32
    y = jnp.einsum('nchw,oc->nohw', x_nchw.astype(jnp.float32),
                   conv_w.astype(jnp.float32))
    scale = (bn_gamma / jnp.sqrt(bn_var + eps))[None, :, None, None]
    bias = (bn_beta - bn_mean * bn_gamma / jnp.sqrt(bn_var + eps)
            )[None, :, None, None]
    y = y * scale + bias
    return y * jax.nn.sigmoid(y)


if __name__ == "__main__":
    key = jax.random.PRNGKey(0)
    k_x, k_w, k_g, k_b, k_m, k_v = jax.random.split(key, 6)

    # Expansion block with in_dim=4, expand_ratio=4 -> out_dim=16, 1x1 conv.
    N, C_IN, C_OUT = 2, 4, 16
    EPS = 1e-3  # AlignVisionConfig.batch_norm_eps default

    conv_w = jax.random.normal(k_w, (C_OUT, C_IN), dtype=jnp.float32) * 0.1
    bn_gamma = 1.0 + 0.1 * jax.random.normal(k_g, (C_OUT,), dtype=jnp.float32)
    bn_beta = 0.1 * jax.random.normal(k_b, (C_OUT,), dtype=jnp.float32)
    bn_mean = 0.1 * jax.random.normal(k_m, (C_OUT,), dtype=jnp.float32)
    bn_var = jnp.abs(jax.random.normal(k_v, (C_OUT,), dtype=jnp.float32)) + 0.5

    # 1) f32, 16x16 spatial (S = 256, multiple of 128).
    x16 = jax.random.normal(k_x, (N, C_IN, 16, 16), dtype=jnp.float32)
    out = jax.block_until_ready(align_vision_expansion_layer(
        x16, conv_w, bn_gamma, bn_beta, bn_mean, bn_var, eps=EPS))
    ref = _reference(x16, conv_w, bn_gamma, bn_beta, bn_mean, bn_var, eps=EPS)
    assert out.shape == (N, C_OUT, 16, 16)
    assert jnp.allclose(out, ref, atol=2e-5, rtol=2e-5)

    # 2) f32, 14x14 spatial (S = 196): exercises the partial lane block —
    #    no wrapper-side pad / slice HBM passes anymore.
    x14 = jax.random.normal(k_x, (N, C_IN, 14, 14), dtype=jnp.float32)
    out14 = jax.block_until_ready(align_vision_expansion_layer(
        x14, conv_w, bn_gamma, bn_beta, bn_mean, bn_var, eps=EPS))
    ref14 = _reference(x14, conv_w, bn_gamma, bn_beta, bn_mean, bn_var, eps=EPS)
    assert out14.shape == (N, C_OUT, 14, 14)
    assert jnp.allclose(out14, ref14, atol=2e-5, rtol=2e-5)

    # 3) bf16 streaming (halves HBM traffic, bf16 MXU on v6e/v7x).
    out_bf = jax.block_until_ready(align_vision_expansion_layer(
        x16, conv_w, bn_gamma, bn_beta, bn_mean, bn_var, eps=EPS,
        stream_dtype=jnp.bfloat16))
    assert out_bf.dtype == jnp.bfloat16
    assert jnp.allclose(out_bf.astype(jnp.float32), ref, atol=5e-2, rtol=5e-2)

    print("KERNEL_OK")
</pallas_src>

<mosaic_0001>
module attributes {stable_mosaic.version = 11 : i64} {
  func.func @_expansion_kernel(%arg0: i32, %arg1: i32, %arg2: i32, %arg3: memref<1x4x256xf32, #tpu.memory_space<vmem>>, %arg4: memref<16x4xf32, #tpu.memory_space<vmem>>, %arg5: memref<16x1xf32, #tpu.memory_space<vmem>>, %arg6: memref<1x16x256xf32, #tpu.memory_space<vmem>>) attributes {dimension_semantics = [#tpu.dimension_semantics<parallel>, #tpu.dimension_semantics<parallel>, #tpu.dimension_semantics<parallel>], iteration_bounds = array<i64: 2, 1, 1>, scalar_prefetch = 0 : i64, scratch_operands = 0 : i64, tpu.core_type = #tpu.core_type<tc>, window_params = [{transform_indices = @transform_0, window_bounds = array<i64: 1, 4, 256>}, {transform_indices = @transform_1, window_bounds = array<i64: 16, 4>}, {transform_indices = @transform_2, window_bounds = array<i64: 16, 1>}, {transform_indices = @transform_3, window_bounds = array<i64: 1, 16, 256>}]} {
    %c0 = arith.constant 0 : index
    %c0_0 = arith.constant 0 : index
    %0 = vector.load %arg4[%c0, %c0_0] : memref<16x4xf32, #tpu.memory_space<vmem>>, vector<16x4xf32>
    %c0_1 = arith.constant 0 : index
    %c0_2 = arith.constant 0 : index
    %c0_3 = arith.constant 0 : index
    %1 = vector.load %arg3[%c0_1, %c0_2, %c0_3] : memref<1x4x256xf32, #tpu.memory_space<vmem>>, vector<1x4x256xf32>
    %2 = vector.shape_cast %1 : vector<1x4x256xf32> to vector<4x256xf32>
    %cst = arith.constant dense<0.000000e+00> : vector<16x256xf32>
    %3 = tpu.matmul %0, %2, %cst {dimension_numbers = #tpu.dot_dimension_numbers<[1], [0], [0], [1], [0, 0, 1, 1], [], []>} : vector<16x4xf32>, vector<4x256xf32>, vector<16x256xf32> -> vector<16x256xf32>
    %c0_4 = arith.constant 0 : index
    %c0_5 = arith.constant 0 : index
    %4 = vector.load %arg5[%c0_4, %c0_5] : memref<16x1xf32, #tpu.memory_space<vmem>>, vector<16x1xf32>
    %5 = vector.broadcast %4 : vector<16x1xf32> to vector<16x256xf32>
    %6 = arith.addf %3, %5 : vector<16x256xf32>
    %7 = arith.negf %6 : vector<16x256xf32>
    %8 = math.exp %7 : vector<16x256xf32>
    %cst_6 = arith.constant 1.000000e+00 : f32
    %9 = vector.broadcast %cst_6 : f32 to vector<16x256xf32>
    %10 = arith.addf %9, %8 : vector<16x256xf32>
    %11 = arith.divf %9, %10 : vector<16x256xf32>
    %12 = arith.mulf %6, %11 : vector<16x256xf32>
    %c0_7 = arith.constant 0 : index
    %c0_8 = arith.constant 0 : index
    %c0_9 = arith.constant 0 : index
    %13 = vector.load %arg6[%c0_7, %c0_8, %c0_9] : memref<1x16x256xf32, #tpu.memory_space<vmem>>, vector<1x16x256xf32>
    %14 = vector.shape_cast %13 : vector<1x16x256xf32> to vector<16x256xf32>
    %15 = vector.shape_cast %12 : vector<16x256xf32> to vector<1x16x256xf32>
    tpu.vector_store %arg6[%c0_7, %c0_8, %c0_9], %15 {strides = array<i32>} : memref<1x16x256xf32, #tpu.memory_space<vmem>>, vector<1x16x256xf32>,
    return
  }
  func.func @transform_0(%arg0: i32, %arg1: i32, %arg2: i32) -> (i32, i32, i32) {
    %c0_i32 = arith.constant 0 : i32
    %c0_i32_0 = arith.constant 0 : i32
    return %arg0, %c0_i32, %arg2 : i32, i32, i32
  }
  func.func @transform_1(%arg0: i32, %arg1: i32, %arg2: i32) -> (i32, i32) {
    %c0_i32 = arith.constant 0 : i32
    %c0_i32_0 = arith.constant 0 : i32
    return %arg1, %c0_i32 : i32, i32
  }
  func.func @transform_2(%arg0: i32, %arg1: i32, %arg2: i32) -> (i32, i32) {
    %c0_i32 = arith.constant 0 : i32
    %c0_i32_0 = arith.constant 0 : i32
    return %arg1, %c0_i32 : i32, i32
  }
  func.func @transform_3(%arg0: i32, %arg1: i32, %arg2: i32) -> (i32, i32, i32) {
    %c0_i32 = arith.constant 0 : i32
    return %arg0, %arg1, %arg2 : i32, i32, i32
  }
}

</mosaic_0001>

<bundles_post_ra>
// kernel: tpu_custom_call.1
= control target key start
LH: loop header
LB: loop body
LE: loop exit
PB: predicated region body
PF: predicated region fallthrough
CT: control target
= control target key end

     0   :  { %8 = vsyncpa [#allocation3], 0  ;;  %s904_s0 = inlined_call_operand.vmem [shape: f32[2,4,256], index: 0, kind: input, shape index: {}]   ;;  %s905_s1 = inlined_call_operand.vmem [shape: f32[16,4], index: 1, kind: input, shape index: {}]   ;;  %s906_s2 = inlined_call_operand.vmem [shape: f32[16,1], index: 2, kind: input, shape index: {}]   ;;  %s907_s3 = inlined_call_operand.hbm [shape: f32[2,16,256], index: 3, kind: output, shape index: {}]  }
   0x1   :  { %10 = vsyncpa [#allocation3 + $0x1], 0  ;;  %s757_s12 = smov 0   ;;  %s759_s13 = smov 0  }
   0x2   :  { %s761_s14 = smov 0   ;;  %s763_s15 = smov 0  }
   0x3   :  { %s765_s16 = smov 0   ;;  %s767_s17 = smov 0  }
   0x4 LB: > { %s550_s18 = sadd.s32 4294967295, %s732_s17   ;;  %s551_s19 = sadd.s32 4294967294, %s732_s17   ;;  %s732_s17 = sphi %s767_s17, %s16_s17   ;;  %s728_s16 = sphi %s765_s16, %s914_s16   ;;  %s724_s15 = sphi %s763_s15, %s913_s15   ;;  %s720_s14 = sphi %s761_s14, %s912_s14   ;;  %s716_s13 = sphi %s759_s13, %s911_s13   ;;  %s712_s12 = sphi %s757_s12, %s910_s12  }
   0x5   : > { %s35_s20 = sadd.s32 1, %s728_s16  ;;  %s126_s21 = sadd.s32 1, %s720_s14 }
   0x6   : > { %p37_p0 = scmp.ge.s32.totalorder %s35_s20, 2  ;;  %p136_p1 = scmp.ne.s32.totalorder %s720_s14, %s716_s13 }
   0x7   : > { %p137_p2 = scmp.eq.s32.totalorder %s550_s18, 1  ;;  %p142_p3 = scmp.ne.s32.totalorder %s716_s13, %s712_s12 }
   0x8   : > { %s916_s20 = smov (%p37_p0, %s35_s20), 0  ;;  %p143_p5 = scmp.eq.s32.totalorder %s551_s19, 1 }
   0x9   : > { %p797_p4 = por %p137_p2, %p136_p1  ;;  %s119_s23 = ssub.s32 %s728_s16, %s916_s20 }
   0xa   : > { %p556_p6 = scmp.ge.s32.totalorder %s732_s17, 1  ;;  %p124_p7 = scmp.eq.s32.totalorder %s119_s23, 0 }
   0xb   : > { %p804_p8 = por %p143_p5, %p142_p3  ;;  %p192_p9 = scmp.lt.s32.totalorder %s732_s17, 3 }
   0xc   : > { %s810_s25 = scalar_select %p124_p7, %s720_s14, %s126_s21  }
   0xd   : > { %p193_p10 = pnand %p556_p6, %p192_p9 }
   0xe   : > { %p231_p11 = scmp.lt.s32.totalorder (!%p193_p10), %s724_s15, 1  ;;  %s227_s18 = sand.u32 (!%p193_p10), 1, %s716_s13  }
   0xf   : > { %196 = sbr.rel (%p193_p10) target bundleno = 204 (0xcc), region = 32  ;;  %s850_s19 = sshll.u32 (!%p193_p10), %s227_s18, 5 }
  0x10   : > { %s576_s21 = sshll.u32 (!%p193_p10), %s724_s15, 5  ;;  %s229_s27 = scalar_lea.vmem (!%p193_p10), [#allocation2], %s850_s19 }
  0x11   : > { %s416_s30 = scalar_lea.sflag (!%p193_p10), [#allocation3], %s227_s18  ;;  %s674_s8 = scalar_lea.hbm (!%p193_p10), %s907_s3, 64 }
  0x14   : > { %v734_v0 = vmov 0   ;;  %v257_v1 = vld [vmem:[%s906_s2] sm:$0xff]  ;;  %s232_s28 = scalar_select %p231_p11, %s724_s15, 1  ;;  %v258_v3 = vld [vmem:[%s906_s2 + $0x8] sm:$0xff]  ;;  %vm280_vm0 = vcmask 1043456   ;;  %vm273_vm1 = vcmask 31744  }
  0x15   : > { %637 = vset.pattern.permute.xlu0 %v734_v0  ;;  %v254_v4 = vld [vmem:[%s905_s1] sm:$0xff]  ;;  %v255_v5 = vld [vmem:[%s905_s1 + $0x8] sm:$0xff]  ;;  %s432_s15 = scalar_lea.hbm %s907_s3, %s576_s21 }
  0x16   : > { %261 = vperm.xlu0 %637, %v257_v1   ;;  %s575_s29 = sshll.u32 %s232_s28, 3  ;;  %s433_s28 = sshll.u32 %s229_s27, 4  ;;  %s434_s28 = int_to_ptr.vmem [resolvable:$true] %s433_s28 }
  0x17   : > { %s238_s5 = scalar_lea.vmem %s904_s0, %s575_s29  ;;  %s435_s29 = sshll.u32 %s432_s15, 4  ;;  %s436_s29 = int_to_ptr.hbm [resolvable:$true] %s435_s29 }
  0x18   : > { %v256_v2 = vld [vmem:[%s238_s5] sm:$0xff]  ;;  %s668_s4 = sshra.s32 %s436_s29, 4  ;;  %s669_s4 = int_to_ptr.hbm [resolvable:$true] %s668_s4 }
  0x19   : > { %270 = vst [vmem:[#allocation1] ss:$2 sm:$0xff] %v256_v2  ;;  %s670_s5 = scalar_lea.hbm %s669_s4, 32  ;;  %p675_p1 = scmp.lt.s32.totalorder %s669_s4, %s907_s3 }
  0x1a   : > { %p671_p12 = scmp.ne.s32.totalorder %s669_s4, %s670_s5  ;;  %p676_p2 = scmp.lt.s32.totalorder %s674_s8, %s670_s5 }
  0x1c   : > { %p672_p13 = pnand %p671_p12, %p797_p4  ;;  %p677_p3 = por %p676_p2, %p675_p1 }
  0x1e   : > { %266 = vperm.xlu0 %637, %v258_v3   ;;  %p673_p0 = pneg %p672_p13 }
  0x20   : > { %v271_v6 = vld.sshfl [vmem:[#allocation1] sm:$0xff pattern:$0x75316420]  ;;  %v272_v7 = vld.sshfl [vmem:[#allocation1 + $0x8] sm:$0xff pattern:$0x75316420]  ;;  %p678_p5 = pnand %p677_p3, %p673_p0 }
  0x21   : > { %560 = vmatpush.msk.msra.mxu0 %vm280_vm0, %v271_v6  ;;  %577 = vmatpush.msk.msra.mxu2 %vm280_vm0, %v271_v6 }
  0x22   : > { %563 = vmatpush.msk.msra.mxu1 %vm280_vm0, %v272_v7  ;;  %578 = vmatpush.msk.msra.mxu3 %vm280_vm0, %v272_v7 }
  0x23   : > { %561 = vmatmul.msk.f32.vlgmr.msra.gmra.mxu0 %vm273_vm1, %v254_v4  ;;  %562 = vmatmul.msk.f32.vlgmr.msra.gmra.mxu2 %vm273_vm1, %v255_v5 }
  0x24   : > { %564 = vmatmul.msk.f32.vlgmr.msra.gmra.mxu1 %vm273_vm1, %v254_v4  ;;  %565 = vmatmul.msk.f32.vlgmr.msra.gmra.mxu3 %vm273_vm1, %v255_v5 }
  0x88   : > { %v262_v8 = vpop.permute.xlu0 %261 }
  0x90   : > { %v267_v15 = vpop.permute.xlu0 %266 }
  0xa0   : > { %v302_v9 = vpop.f32.mrf.mxu0 }
  0xa1   : > { %v829_v10 = vadd.f32 %v302_v9, %v262_v8  ;;  %v325_v11 = vpop.f32.mrf.mxu1 }
  0xa2   : > { %v831_v12 = vadd.f32 %v325_v11, %v262_v8 }
  0xa3   : > { %v566_v13 = vmul.f32 -1.442695, %v829_v10 }
  0xa4   : > { %v567_v14 = vmul.f32 -1.442695, %v831_v12 }
  0xa5   : > { %638 = vpow2.f32 %v566_v13 }
  0xa6   : > { %640 = vpow2.f32 %v567_v14  ;;  %v305_v16 = vpop.f32.mrf.mxu2 }
  0xa7   : > { %v835_v17 = vadd.f32 %v305_v16, %v267_v15  ;;  %v328_v18 = vpop.f32.mrf.mxu3 }
  0xa8   : > { %v837_v19 = vadd.f32 %v328_v18, %v267_v15 }
  0xa9   : > { %v568_v20 = vmul.f32 -1.442695, %v835_v17 }
  0xaa   : > { %v569_v21 = vmul.f32 -1.442695, %v837_v19 }
  0xab   : > { %v639_v22 = vpop.eup %638  ;;  %642 = vpow2.f32 %v568_v20 }
  0xac   : > { %v641_v23 = vpop.eup %640  ;;  %v343_v24 = vadd.f32 1.0, %v639_v22  ;;  %644 = vpow2.f32 %v569_v21 }
  0xad   : > { %v344_v25 = vadd.f32 1.0, %v641_v23 }
  0xae   : > { %646 = vrcp.f32 %v343_v24  ;;  %v356_v35 = vand.u32 2147483647, %v343_v24  ;;  %v358_v36 = vand.u32 2147483648, %v343_v24  ;;  %vm352_vm3 = vweird.f32 %v343_v24 }
  0xaf   : > { %648 = vrcp.f32 %v344_v25  ;;  %v371_v38 = vand.u32 2147483647, %v344_v25  ;;  %v373_v39 = vand.u32 2147483648, %v344_v25  ;;  %vm367_vm4 = vweird.f32 %v344_v25 }
  0xb0   : > { %vm357_vm6 = vcmp.eq.f32.partialorder %v356_v35, 8.507059e+37  ;;  %v359_v45 = vor.u32 1.1754944e-38, %v358_v36 }
  0xb1   : > { %v643_v26 = vpop.eup %642  ;;  %vm372_vm8 = vcmp.eq.f32.partialorder %v371_v38, 8.507059e+37  ;;  %v374_v48 = vor.u32 1.1754944e-38, %v373_v39 }
  0xb2   : > { %v645_v27 = vpop.eup %644  ;;  %v841_v28 = vadd.f32 1.0, %v643_v26 }
  0xb3   : > { %v843_v29 = vadd.f32 1.0, %v645_v27 }
  0xb4   : > { %v647_v30 = vpop.eup %646  ;;  %650 = vrcp.f32 %v841_v28  ;;  %v386_v52 = vand.u32 2147483647, %v841_v28  ;;  %v388_v53 = vand.u32 2147483648, %v841_v28  ;;  %vm382_vm12 = vweird.f32 %v841_v28 }
  0xb5   : > { %v649_v31 = vpop.eup %648  ;;  %v348_v32 = vmul.f32 %v647_v30, %v343_v24  ;;  %652 = vrcp.f32 %v843_v29  ;;  %vm353_vm2 = vweird.f32 %v647_v30  ;;  %v403_v57 = vand.u32 2147483648, %v843_v29 }
  0xb6   : > { %v363_v33 = vmul.f32 %v649_v31, %v344_v25  ;;  %vm368_vm5 = vweird.f32 %v649_v31  ;;  %vm354_vm7 = vmor %vm352_vm3, %vm353_vm2  ;;  %v401_v63 = vand.u32 2147483647, %v843_v29  ;;  %v389_v1 = vor.u32 1.1754944e-38, %v388_v53 }
  0xb7   : > { %v349_v34 = vsub.f32 1.0, %v348_v32  ;;  %vm369_vm9 = vmor %vm367_vm4, %vm368_vm5  ;;  %vm397_vm14 = vweird.f32 %v843_v29  ;;  %vm387_vm15 = vcmp.eq.f32.partialorder %v386_v52, 8.507059e+37  ;;  %v404_v4 = vor.u32 1.1754944e-38, %v403_v57 }
  0xb8   : > { %v364_v37 = vsub.f32 1.0, %v363_v33  ;;  %vm402_vm1 = vcmp.eq.f32.partialorder %v401_v63, 8.507059e+37 }
  0xb9   : > { %v350_v40 = vmul.f32 %v647_v30, %v349_v34 }
  0xba   : > { %v651_v41 = vpop.eup %650  ;;  %v365_v42 = vmul.f32 %v649_v31, %v364_v37 }
  0xbb   : > { %v653_v43 = vpop.eup %652  ;;  %v351_v44 = vadd.f32 %v647_v30, %v350_v40  ;;  %v378_v46 = vmul.f32 %v651_v41, %v841_v28  ;;  %vm383_vm10 = vweird.f32 %v651_v41 }
  0xbc   : > { %v366_v47 = vadd.f32 %v649_v31, %v365_v42  ;;  %v393_v49 = vmul.f32 %v653_v43, %v843_v29  ;;  %vm398_vm11 = vweird.f32 %v653_v43  ;;  %vm384_vm13 = vmor %vm382_vm12, %vm383_vm10 }
  0xbd   : > { %v355_v50 = vsel %vm354_vm7, %v647_v30, %v351_v44  ;;  %v379_v51 = vsub.f32 1.0, %v378_v46  ;;  %vm399_vm0 = vmor %vm397_vm14, %vm398_vm11 }
  0xbe   : > { %v360_v54 = vsel %vm357_vm6, %v359_v45, %v355_v50  ;;  %v370_v55 = vsel %vm369_vm9, %v649_v31, %v366_v47  ;;  %v394_v56 = vsub.f32 1.0, %v393_v49 }
  0xbf   : > { %v407_v58 = vmul.f32 %v360_v54, %v829_v10  ;;  %v375_v59 = vsel %vm372_vm8, %v374_v48, %v370_v55  ;;  %v380_v60 = vmul.f32 %v651_v41, %v379_v51 }
  0xc0   : > { %v408_v61 = vmul.f32 %v375_v59, %v831_v12  ;;  %v395_v62 = vmul.f32 %v653_v43, %v394_v56 }
  0xc1   : > { %411 = vst [vmem:[%s229_s27] sm:$0xff] %v407_v58  ;;  %v381_v0 = vadd.f32 %v651_v41, %v380_v60 }
  0xc2   : > { %412 = vst [vmem:[%s229_s27 + $0x8] sm:$0xff] %v408_v61  ;;  %v396_v2 = vadd.f32 %v653_v43, %v395_v62 }
  0xc3   : > { %v385_v3 = vsel %vm384_vm13, %v651_v41, %v381_v0 }
  0xc4   : > { %v390_v5 = vsel %vm387_vm15, %v389_v1, %v385_v3  ;;  %v400_v6 = vsel %vm399_vm0, %v653_v43, %v396_v2 }
  0xc5   : > { %v409_v7 = vmul.f32 %v390_v5, %v835_v17  ;;  %v405_v8 = vsel %vm402_vm1, %v404_v4, %v400_v6 }
  0xc6   : > { %v410_v9 = vmul.f32 %v405_v8, %v837_v19 }
  0xc7   : > { %413 = vst [vmem:[%s229_s27 + $0x10] sm:$0xff] %v409_v7 }
  0xc8   : > { %414 = vst [vmem:[%s229_s27 + $0x18] sm:$0xff] %v410_v9 }
  0xc9   : > { %681 = shalt.err (!%p678_p5)
}
  0xca   : > { %s735_s11 = smov 256   ;;  %s736_s18 = smov 16  }
  0xcb   : > { %579 = dma.vmem_to_hbm [thread:$0]  (%p797_p4), %s434_s28, 512, %s436_s29, %s416_s30, %s735_s11, %s735_s11, %s736_s18  }
  0xcc PF: > { %p585_p6 = scmp.ge.s32.totalorder %s732_s17, 2  ;;  %s450_s19 = sand.u32 1, %s712_s12  }
  0xcd   : > { %s451_s21 = scalar_lea.sflag [#allocation3], %s450_s19 }
  0xce   : > { %p582_p7 = pnand %p585_p6, %p804_p8 }
  0xd0   : > { %p583_p9 = pneg %p582_p7 }
  0xd2   : > { %707 = dma.done.wait (%p583_p9), %s451_s21, 512  }
  0xd3   : > { %709 = vsyncadd (%p583_p9), %s451_s21, 4294966784  ;;  %s16_s17 = sadd.s32 1, %s732_s17   ;;  %s910_s12 = smov %s716_s13 }
  0xd4   : > { %p13_p10 = scmp.ge.s32.totalorder %s16_s17, 4   ;;  %s911_s13 = smov %s720_s14 }
  0xd5   : > { %s912_s14 = smov %s810_s25  ;;  %s913_s15 = smov %s728_s16 }
  0xd6   : > { %s914_s16 = smov %s916_s20  ;;  %15 = sbr.rel (!%p13_p10) target bundleno = 4 (0x4), region = 73 }
  0xdb   :  { %457 = vsyncpa [#allocation3], 1 }
  0xdc   :  { %459 = vsyncpa [#allocation3 + $0x1], 1 }

</bundles_post_ra>
